<compile_context>
chip_gen: v6e
topology: v6e:2x2x1
jax: 0.10.0
libtpu: 0.0.40
codegen_flags: <defaults>
</compile_context>

<pallas_src>
import functools

import jax
import jax.numpy as jnp
from jax.experimental import pallas as pl
from jax.experimental.pallas import tpu as pltpu


# ----------------------------- kernel -------------------------------------- #

def _zpool_kernel(x_ref, o_ref, max_sc, sum_sc, *, n_ch, c_rem):
    """One (Nb, Cb, T_HW) block; channel grid axis (2) is the reduction axis."""
    k = pl.program_id(2)
    nk = pl.num_programs(2)

    @pl.when(k == 0)
    def _init():
        max_sc[...] = jnp.full_like(max_sc, -jnp.inf)
        sum_sc[...] = jnp.zeros_like(sum_sc)

    x = x_ref[...]                                    # (Nb, Cb, T_HW), native dtype

    if c_rem:
        # Final channel block carries only c_rem valid rows -> mask the padding.
        row = jax.lax.broadcasted_iota(jnp.int32, x.shape, 1)
        limit = jnp.where(k == nk - 1, c_rem, x.shape[1])
        valid = row < limit
        x_max = jnp.where(valid, x, jnp.full_like(x, -jnp.inf))
        x_sum = jnp.where(valid, x, jnp.zeros_like(x))
    else:
        x_max, x_sum = x, x

    blk_max = jnp.max(x_max, axis=1, keepdims=True)                       # exact
    blk_sum = jnp.sum(x_sum, axis=1, keepdims=True, dtype=jnp.float32)    # f32 acc
    max_sc[...] = jnp.maximum(max_sc[...], blk_max.astype(jnp.float32))
    sum_sc[...] = sum_sc[...] + blk_sum

    @pl.when(k == nk - 1)
    def _finalize():
        o_ref[:, 0:1, :] = max_sc[...].astype(o_ref.dtype)
        o_ref[:, 1:2, :] = (sum_sc[...] / jnp.float32(n_ch)).astype(o_ref.dtype)


# ----------------------------- tiling -------------------------------------- #

_LANE = 128


def _sublane(itemsize):
    # sublane tile height for this dtype (f32: 8, bf16: 16, int8/fp8: 32)
    return max(8, 32 // itemsize)


def _slab_bytes(rows, cols, itemsize):
    """VMEM bytes of a (rows, cols) slab after (sublane, lane) tile padding."""
    sub = _sublane(itemsize)
    return (pl.cdiv(rows, sub) * sub) * (pl.cdiv(cols, _LANE) * _LANE) * itemsize


def _choose_blocks(N, C, HW, itemsize, target_bytes):
    """Pick (nb, c_blk, thw) so input blocks are ~target_bytes and lane-dense."""
    sub = _sublane(itemsize)
    min_thw = HW if HW <= _LANE else _LANE

    # Channel axis must be tiled if a minimal lane tile with full C blows the budget.
    if _slab_bytes(C, min_thw, itemsize) > target_bytes and C > sub:
        thw = min_thw
        row_bytes = _slab_bytes(sub, thw, itemsize)          # bytes per `sub` rows
        c_blk = max(sub, (target_bytes // row_bytes) * sub)
        c_blk = min(c_blk, pl.cdiv(C, sub) * sub)
        return 1, c_blk, thw

    c_blk = C
    if HW <= _LANE:
        thw = HW
    else:
        hw_pad = pl.cdiv(HW, _LANE) * _LANE
        col_bytes = _slab_bytes(C, _LANE, itemsize)          # one 128-lane column
        max_thw = max(_LANE, (target_bytes // col_bytes) * _LANE)
        n_blocks = pl.cdiv(hw_pad, min(max_thw, hw_pad))
        if n_blocks == 1:
            thw = HW                                          # full dim: no padding
        else:
            thw = pl.cdiv(pl.cdiv(HW, n_blocks), _LANE) * _LANE   # balanced tiles

    nb = 1
    if thw == HW:  # whole spatial extent in one lane block -> fold batch elements
        per_batch = _slab_bytes(C, thw, itemsize)
        nb = max(1, min(N, target_bytes // per_batch))
        if nb >= N and N >= 2:
            nb = pl.cdiv(N, 2)   # keep >= 2 grid blocks (feeds both v7x TCs)
    return nb, c_blk, thw


# ----------------------------- wrapper -------------------------------------- #

def zpool(x, *, target_block_bytes=8 << 20):
    """x: (N, C, H, W) -> (N, 2, H, W) = cat([max over C, mean over C], dim=1)."""
    N, C, H, W = x.shape
    HW = H * W
    itemsize = jnp.dtype(x.dtype).itemsize
    x_flat = x.reshape(N, C, HW)

    nb, c_blk, thw = _choose_blocks(N, C, HW, itemsize, target_block_bytes)
    grid = (pl.cdiv(N, nb), pl.cdiv(HW, thw), pl.cdiv(C, c_blk))

    kernel = functools.partial(_zpool_kernel, n_ch=C, c_rem=C % c_blk)

    # VMEM request derived from actual (padded) block footprints, not hardcoded.
    in_blk = nb * _slab_bytes(c_blk, thw, itemsize)
    out_blk = nb * _slab_bytes(2, thw, itemsize)
    scr_blk = 2 * nb * _slab_bytes(1, thw, 4)
    f32_tmp = nb * _slab_bytes(c_blk, thw, 4) if itemsize < 4 else 0   # f32-sum temp
    vmem_limit = int(2 * (in_blk + out_blk) + scr_blk + f32_tmp + (4 << 20))
    vmem_limit = max(vmem_limit, 8 << 20)

    out_flat = pl.pallas_call(
        kernel,
        out_shape=jax.ShapeDtypeStruct((N, 2, HW), x.dtype),
        grid_spec=pltpu.PrefetchScalarGridSpec(
            num_scalar_prefetch=0,
            grid=grid,
            in_specs=[pl.BlockSpec((nb, c_blk, thw), lambda n, h, k: (n, k, h))],
            out_specs=pl.BlockSpec((nb, 2, thw), lambda n, h, k: (n, 0, h)),
            scratch_shapes=[
                pltpu.VMEM((nb, 1, thw), jnp.float32),   # running max
                pltpu.VMEM((nb, 1, thw), jnp.float32),   # running sum
            ],
        ),
        compiler_params=pltpu.CompilerParams(
            dimension_semantics=("parallel", "parallel", "arbitrary"),
            vmem_limit_bytes=vmem_limit,
        ),
        cost_estimate=pl.CostEstimate(
            flops=2 * N * C * HW,
            transcendentals=0,
            bytes_accessed=(N * C * HW + 2 * N * HW) * itemsize,
        ),
    )(x_flat)

    return out_flat.reshape(N, 2, H, W)


# ----------------------------- test ----------------------------------------- #

def _reference(x):
    x32 = x.astype(jnp.float32)
    ref = jnp.concatenate(
        [jnp.max(x32, axis=1, keepdims=True), jnp.mean(x32, axis=1, keepdims=True)],
        axis=1,
    )
    return ref.astype(x.dtype)


if __name__ == "__main__":
    key = jax.random.PRNGKey(0)
    k0, k1, k2 = jax.random.split(key, 3)

    # Primary small shape from the module's typical use.
    x = jax.random.normal(k0, (2, 4, 16, 16), dtype=jnp.float32)
    out = zpool(x)
    jax.block_until_ready(out)
    assert out.shape == (2, 2, 16, 16), out.shape
    assert jnp.allclose(out, _reference(x), atol=1e-5, rtol=1e-5), "f32 mismatch"

    # Awkward shape: odd N, C not a multiple of the channel tile, HW not a multiple
    # of 128 — exercises cdiv edge padding and the channel-accumulation path.
    x2 = jax.random.normal(k1, (3, 20, 9, 17), dtype=jnp.float32)
    out2 = zpool(x2, target_block_bytes=2048)   # tiny budget forces channel tiling
    jax.block_until_ready(out2)
    assert out2.shape == (3, 2, 9, 17), out2.shape
    assert jnp.allclose(out2, _reference(x2), atol=1e-5, rtol=1e-5), "c-tiled mismatch"

    # bf16 path with an N-axis edge block (batch folded to 3 of 5).
    x3 = jax.random.normal(k2, (5, 4, 4, 6), dtype=jnp.bfloat16)
    out3 = zpool(x3)
    jax.block_until_ready(out3)
    assert out3.shape == (5, 2, 4, 6), out3.shape
    assert jnp.allclose(out3.astype(jnp.float32), _reference(x3).astype(jnp.float32),
                        atol=2e-2, rtol=2e-2), "bf16 mismatch"

    print("KERNEL_OK")
</pallas_src>

<mosaic_0001>
module attributes {stable_mosaic.version = 11 : i64} {
  func.func @_zpool_kernel(%arg0: i32, %arg1: i32, %arg2: i32, %arg3: memref<1x4x256xf32, #tpu.memory_space<vmem>>, %arg4: memref<1x2x256xf32, #tpu.memory_space<vmem>>, %arg5: memref<1x1x256xf32, #tpu.memory_space<vmem>>, %arg6: memref<1x1x256xf32, #tpu.memory_space<vmem>>) attributes {dimension_semantics = [#tpu.dimension_semantics<parallel>, #tpu.dimension_semantics<parallel>, #tpu.dimension_semantics<arbitrary>], iteration_bounds = array<i64: 2, 1, 1>, scalar_prefetch = 0 : i64, scratch_operands = 2 : i64, tpu.core_type = #tpu.core_type<tc>, window_params = [{transform_indices = @transform_0, window_bounds = array<i64: 1, 4, 256>}, {transform_indices = @transform_1, window_bounds = array<i64: 1, 2, 256>}]} {
    %c0_i32 = arith.constant 0 : i32
    %0 = arith.cmpi eq, %arg2, %c0_i32 : i32
    %1 = arith.extui %0 : i1 to i32
    %c0_i32_0 = arith.constant 0 : i32
    %2 = arith.cmpi ne, %1, %c0_i32_0 : i32
    scf.if %2 {
      %cst_18 = arith.constant 0xFF800000 : f32
      %17 = vector.broadcast %cst_18 : f32 to vector<1x1x256xf32>
      %c0_19 = arith.constant 0 : index
      %c0_20 = arith.constant 0 : index
      %c0_21 = arith.constant 0 : index
      %18 = vector.load %arg5[%c0_19, %c0_20, %c0_21] : memref<1x1x256xf32, #tpu.memory_space<vmem>>, vector<1x1x256xf32>
      tpu.vector_store %arg5[%c0_19, %c0_20, %c0_21], %17 {strides = array<i32>} : memref<1x1x256xf32, #tpu.memory_space<vmem>>, vector<1x1x256xf32>,
      %cst_22 = arith.constant 0.000000e+00 : f32
      %19 = vector.broadcast %cst_22 : f32 to vector<1x1x256xf32>
      %c0_23 = arith.constant 0 : index
      %c0_24 = arith.constant 0 : index
      %c0_25 = arith.constant 0 : index
      %20 = vector.load %arg6[%c0_23, %c0_24, %c0_25] : memref<1x1x256xf32, #tpu.memory_space<vmem>>, vector<1x1x256xf32>
      tpu.vector_store %arg6[%c0_23, %c0_24, %c0_25], %19 {strides = array<i32>} : memref<1x1x256xf32, #tpu.memory_space<vmem>>, vector<1x1x256xf32>,
    } else {
    }
    %c0 = arith.constant 0 : index
    %c0_1 = arith.constant 0 : index
    %c0_2 = arith.constant 0 : index
    %3 = vector.load %arg3[%c0, %c0_1, %c0_2] : memref<1x4x256xf32, #tpu.memory_space<vmem>>, vector<1x4x256xf32>
    %cst = arith.constant dense<0xFF800000> : vector<1x256xf32>
    %4 = vector.multi_reduction <maximumf>, %3, %cst [1] : vector<1x4x256xf32> to vector<1x256xf32>
    %5 = vector.shape_cast %4 : vector<1x256xf32> to vector<1x1x256xf32>
    %cst_3 = arith.constant dense<0.000000e+00> : vector<1x256xf32>
    %6 = vector.multi_reduction <add>, %3, %cst_3 [1] : vector<1x4x256xf32> to vector<1x256xf32>
    %7 = vector.shape_cast %6 : vector<1x256xf32> to vector<1x1x256xf32>
    %c0_4 = arith.constant 0 : index
    %c0_5 = arith.constant 0 : index
    %c0_6 = arith.constant 0 : index
    %8 = vector.load %arg5[%c0_4, %c0_5, %c0_6] : memref<1x1x256xf32, #tpu.memory_space<vmem>>, vector<1x1x256xf32>
    %9 = arith.maximumf %8, %5 : vector<1x1x256xf32>
    %c0_7 = arith.constant 0 : index
    %c0_8 = arith.constant 0 : index
    %c0_9 = arith.constant 0 : index
    %10 = vector.load %arg5[%c0_7, %c0_8, %c0_9] : memref<1x1x256xf32, #tpu.memory_space<vmem>>, vector<1x1x256xf32>
    tpu.vector_store %arg5[%c0_7, %c0_8, %c0_9], %9 {strides = array<i32>} : memref<1x1x256xf32, #tpu.memory_space<vmem>>, vector<1x1x256xf32>,
    %c0_10 = arith.constant 0 : index
    %c0_11 = arith.constant 0 : index
    %c0_12 = arith.constant 0 : index
    %11 = vector.load %arg6[%c0_10, %c0_11, %c0_12] : memref<1x1x256xf32, #tpu.memory_space<vmem>>, vector<1x1x256xf32>
    %12 = arith.addf %11, %7 : vector<1x1x256xf32>
    %c0_13 = arith.constant 0 : index
    %c0_14 = arith.constant 0 : index
    %c0_15 = arith.constant 0 : index
    %13 = vector.load %arg6[%c0_13, %c0_14, %c0_15] : memref<1x1x256xf32, #tpu.memory_space<vmem>>, vector<1x1x256xf32>
    tpu.vector_store %arg6[%c0_13, %c0_14, %c0_15], %12 {strides = array<i32>} : memref<1x1x256xf32, #tpu.memory_space<vmem>>, vector<1x1x256xf32>,
    %c0_i32_16 = arith.constant 0 : i32
    %14 = arith.cmpi eq, %arg2, %c0_i32_16 : i32
    %15 = arith.extui %14 : i1 to i32
    %c0_i32_17 = arith.constant 0 : i32
    %16 = arith.cmpi ne, %15, %c0_i32_17 : i32
    scf.if %16 {
      %c0_18 = arith.constant 0 : index
      %c0_19 = arith.constant 0 : index
      %c0_20 = arith.constant 0 : index
      %17 = vector.load %arg5[%c0_18, %c0_19, %c0_20] : memref<1x1x256xf32, #tpu.memory_space<vmem>>, vector<1x1x256xf32>
      %c0_21 = arith.constant 0 : index
      %c0_22 = arith.constant 0 : index
      %c0_23 = arith.constant 0 : index
      %18 = vector.load %arg4[%c0_21, %c0_22, %c0_23] : memref<1x2x256xf32, #tpu.memory_space<vmem>>, vector<1x1x256xf32>
      tpu.vector_store %arg4[%c0_21, %c0_22, %c0_23], %17 {strides = array<i32>} : memref<1x2x256xf32, #tpu.memory_space<vmem>>, vector<1x1x256xf32>,
      %c0_24 = arith.constant 0 : index
      %c0_25 = arith.constant 0 : index
      %c0_26 = arith.constant 0 : index
      %19 = vector.load %arg6[%c0_24, %c0_25, %c0_26] : memref<1x1x256xf32, #tpu.memory_space<vmem>>, vector<1x1x256xf32>
      %cst_27 = arith.constant 4.000000e+00 : f32
      %20 = vector.broadcast %cst_27 : f32 to vector<1x1x256xf32>
      %21 = arith.divf %19, %20 : vector<1x1x256xf32>
      %c0_28 = arith.constant 0 : index
      %c1 = arith.constant 1 : index
      %c0_29 = arith.constant 0 : index
      %22 = vector.load %arg4[%c0_28, %c1, %c0_29] : memref<1x2x256xf32, #tpu.memory_space<vmem>>, vector<1x1x256xf32>
      tpu.vector_store %arg4[%c0_28, %c1, %c0_29], %21 {strides = array<i32>} : memref<1x2x256xf32, #tpu.memory_space<vmem>>, vector<1x1x256xf32>,
    } else {
    }
    return
  }
  func.func @transform_0(%arg0: i32, %arg1: i32, %arg2: i32) -> (i32, i32, i32) {
    %c0_i32 = arith.constant 0 : i32
    return %arg0, %arg2, %arg1 : i32, i32, i32
  }
  func.func @transform_1(%arg0: i32, %arg1: i32, %arg2: i32) -> (i32, i32, i32) {
    %c0_i32 = arith.constant 0 : i32
    %c0_i32_0 = arith.constant 0 : i32
    return %arg0, %c0_i32, %arg1 : i32, i32, i32
  }
}

</mosaic_0001>

<bundles_post_ra>
// kernel: tpu_custom_call.1
= control target key start
LH: loop header
LB: loop body
LE: loop exit
PB: predicated region body
PF: predicated region fallthrough
CT: control target
= control target key end

     0   :  { %6 = vsyncpa [#allocation5], 0  ;;  %s735_s0 = inlined_call_operand.hbm [shape: f32[2,4,256], index: 0, kind: input, shape index: {}]   ;;  %s736_s1 = inlined_call_operand.hbm [shape: f32[2,2,256], index: 1, kind: output, shape index: {}]  }
   0x1   :  { %8 = vsyncpa [#allocation5 + $0x1], 0 }
   0x2   :  { %9 = vsyncpa [#allocation6], 0 }
   0x3   :  { %11 = vsyncpa [#allocation6 + $0x1], 0  ;;  %s578_s6 = smov 0   ;;  %s580_s7 = smov 0  }
   0x4   :  { %s582_s8 = smov 0   ;;  %s584_s9 = smov 0  }
   0x5   :  { %s586_s10 = smov 0   ;;  %s588_s11 = smov 0  }
   0x6 LB: > { %s369_s12 = sadd.s32 4294967295, %s561_s11   ;;  %s370_s13 = sadd.s32 4294967294, %s561_s11   ;;  %s561_s11 = sphi %s588_s11, %s17_s11   ;;  %s557_s10 = sphi %s586_s10, %s750_s10   ;;  %s553_s9 = sphi %s584_s9, %s749_s9   ;;  %s549_s8 = sphi %s582_s8, %s748_s8   ;;  %s545_s7 = sphi %s580_s7, %s747_s7   ;;  %s541_s6 = sphi %s578_s6, %s746_s6  }
   0x7   : > { %s36_s14 = sadd.s32 1, %s557_s10  ;;  %s47_s15 = sadd.s32 1, %s549_s8 }
   0x8   : > { %p38_p0 = scmp.ge.s32.totalorder %s36_s14, 2  ;;  %p54_p1 = scmp.ne.s32.totalorder %s549_s8, %s545_s7 }
   0x9   : > { %p55_p2 = scmp.eq.s32.totalorder %s561_s11, 0  ;;  %p60_p3 = scmp.ne.s32.totalorder %s545_s7, %s541_s6 }
   0xa   : > { %s752_s14 = smov (%p38_p0, %s36_s14), 0  ;;  %p61_p5 = scmp.eq.s32.totalorder %s369_s12, 0 }
   0xb   : > { %p619_p4 = por %p55_p2, %p54_p1  ;;  %s40_s17 = ssub.s32 %s557_s10, %s752_s14 }
   0xc   : > { %p86_p6 = scmp.eq.s32.totalorder %s369_s12, 1  ;;  %p45_p7 = scmp.eq.s32.totalorder %s40_s17, 0 }
   0xd   : > { %p625_p8 = por %p61_p5, %p60_p3  ;;  %p92_p10 = scmp.eq.s32.totalorder %s370_s13, 1 }
   0xe   : > { %p629_p9 = por %p86_p6, %p54_p1  ;;  %p399_p13 = scmp.lt.s32.totalorder %s561_s11, 2 }
   0xf   : > { %s634_s20 = scalar_select %p45_p7, %s549_s8, %s47_s15  }
  0x10   : > { %p636_p11 = por %p92_p10, %p60_p3  ;;  %s112_s22 = sand.u32 1, %s549_s8  }
  0x11   : > { %s373_s23 = sshll.u32 %s112_s22, 3  ;;  %s385_s24 = sshll.u32 %s557_s10, 7 }
  0x12   : > { %s740_s21 = scalar_select %p636_p11, 1, 0 }
  0x13   : > { %s126_s27 = scalar_lea.hbm %s735_s0, %s385_s24  ;;  %s116_s28 = scalar_lea.vmem [#allocation4], %s373_s23 }
  0x14   : > { %s128_s29 = sshll.u32 %s116_s28, 4  ;;  %p649_p0 = pnand %p399_p13, %p619_p4  ;;  %s129_s29 = int_to_ptr.vmem [resolvable:$true] %s128_s29 }
  0x15   : > { %p376_p1 = scmp.ge.s32.totalorder %s561_s11, 1  ;;  %p133_p2 = scmp.lt.s32.totalorder %s561_s11, 3 }
  0x16   : > { %s113_s2 = scalar_lea.sflag [#allocation5], %s112_s22  ;;  %p455_p3 = pneg %p649_p0 }
  0x17   : > { %s466_s3 = scalar_lea.vmem %s129_s29, 128  ;;  %s563_s4 = smov [#allocation4]  }
  0x18   : > { %p467_p5 = scmp.ne.s32.totalorder %s129_s29, %s466_s3  ;;  %s471_s5 = sshll.u32 %s563_s4, 4  ;;  %s472_s5 = int_to_ptr.vmem [resolvable:$false] %s471_s5 }
  0x19   : > { %s473_s12 = scalar_lea.vmem %s472_s5, 256  ;;  %p474_p10 = scmp.lt.s32.totalorder %s129_s29, %s472_s5 }
  0x1a   : > { %p469_p6 = pnand %p467_p5, %p455_p3  ;;  %p475_p12 = scmp.lt.s32.totalorder %s473_s12, %s466_s3 }
  0x1c   : > { %p470_p7 = pneg %p469_p6  ;;  %p476_p4 = por %p475_p12, %p474_p10 }
  0x1e   : > { %p477_p13 = pnand %p476_p4, %p470_p7 }
  0x20   : > { %480 = shalt.err (!%p477_p13)
}
  0x21   : > { %394 = dma.hbm_to_vmem [thread:$0]  (!%p649_p0), %s126_s27, 128, %s129_s29, %s113_s2  }
  0x22   : > { %p134_p11 = pnand %p376_p1, %p133_p2 }
  0x23   : > { %s664_s13 = sand.u32 (!%p134_p11), 1, %s545_s7  }
  0x24   : > { %137 = sbr.rel (%p134_p11) target bundleno = 89 (0x59), region = 24  ;;  %s377_s15 = sshll.u32 (!%p134_p11), %s664_s13, 3 }
  0x25   : > { %s140_s16 = scalar_lea.sflag (!%p134_p11), [#allocation5], %s664_s13  ;;  %s143_s17 = scalar_lea.vmem (!%p134_p11), [#allocation4], %s377_s15 }
  0x29   : > { %532 = dma.done.wait (%p625_p8), %s140_s16, 128  }
  0x2a   : > { %534 = vsyncadd (%p625_p8), %s140_s16, 4294967168  ;;  %v168_v0 = vlaneseq  ;;  %v564_v2 = vmov 0.0   ;;  %v565_v3 = vmov -inf   ;;  %vm178_vm1 = vcmask 1043456   ;;  %v174_v4 = vld [vmem:[%s143_s17] sm:$0xff]  ;;  %s378_s18 = sshll.u32 %s664_s13, 2 }
  0x2b   : > { %v176_v5 = vcombine.high %v174_v4, %v174_v4  ;;  %v193_v6 = vsel %vm178_vm1, %v174_v4, 0.0  ;;  %v179_v7 = vsel %vm178_vm1, %v174_v4, -inf  ;;  %v566_v16 = vmov 1966171168   ;;  %s161_s22 = scalar_lea.vmem [#allocation7], %s378_s18  ;;  %s386_s24 = sshll.u32 %s553_s9, 6 }
  0x2c   : > { %vm672_vm0 = vcmp.lt.s32.totalorder %v168_v0, 256  ;;  %v194_v8 = vrot.slane %v193_v6, 4  ;;  %v180_v9 = vrot.slane %v179_v7, 4  ;;  %v212_v17 = vunpack.c.l.s4 %v566_v16  ;;  %s280_s23 = sshll.u32 %s161_s22, 4  ;;  %s278_s27 = scalar_lea.hbm %s736_s1, %s386_s24  ;;  %s688_s23 = int_to_ptr.vmem [resolvable:$true] %s280_s23 }
  0x2d   : > { %173 = vst.msk [vmem:[#allocation3] sm:$0x3] %vm672_vm0, %v564_v2  ;;  %172 = vst.msk [vmem:[#allocation2] sm:$0x3] %vm672_vm0, %v565_v3  ;;  %v200_v10 = vsel %vm178_vm1, %v176_v5, 0.0  ;;  %v186_v11 = vsel %vm178_vm1, %v176_v5, -inf }
  0x2e   : > { %v195_v12 = vadd.f32 %v194_v8, %v193_v6  ;;  %v201_v13 = vrot.slane %v200_v10, 4  ;;  %v181_v14 = vmax.f32 %v179_v7, %v180_v9  ;;  %v187_v15 = vrot.slane %v186_v11, 4  ;;  %s264_s28 = scalar_lea.sflag [#allocation6], %s664_s13  ;;  %s481_s9 = scalar_lea.vmem %s688_s23, 64 }
  0x2f   : > { %v213_v26 = vunpack.c.0.s8 %v212_v17  ;;  %v215_v27 = vshrl.u32 %v168_v0, 7  ;;  %p482_p8 = scmp.ne.s32.totalorder %s688_s23, %s481_s9  ;;  %s567_s29 = smov [#allocation7]  }
  0x30   : > { %v196_v18 = vrot.slane %v195_v12, 2  ;;  %v202_v19 = vadd.f32 %v201_v13, %v200_v10  ;;  %v182_v20 = vrot.slane %v181_v14, 2  ;;  %v188_v21 = vmax.f32 %v186_v11, %v187_v15  ;;  %s485_s30 = sshll.u32 %s567_s29, 4  ;;  %s486_s30 = int_to_ptr.vmem [resolvable:$false] %s485_s30 }
  0x31   : > { %v216_v36 = vsub.s32 %v213_v26, %v215_v27  ;;  %p483_p11 = pnand %p482_p8, %p629_p9  ;;  %s487_s2 = scalar_lea.vmem %s486_s30, 128 }
  0x32   : > { %v197_v22 = vadd.f32 %v196_v18, %v195_v12  ;;  %v203_v23 = vrot.slane %v202_v19, 2  ;;  %v183_v24 = vmax.f32 %v181_v14, %v182_v20  ;;  %v189_v25 = vrot.slane %v188_v21, 2  ;;  %p488_p0 = scmp.lt.s32.totalorder %s688_s23, %s486_s30  ;;  %p489_p1 = scmp.lt.s32.totalorder %s487_s2, %s481_s9 }
  0x33   : > { %p484_p12 = pneg %p483_p11 }
  0x34   : > { %v198_v28 = vrot.slane %v197_v22, 1  ;;  %v204_v29 = vadd.f32 %v203_v23, %v202_v19  ;;  %v184_v30 = vrot.slane %v183_v24, 1  ;;  %v190_v31 = vmax.f32 %v188_v21, %v189_v25  ;;  %v232_v43 = vld [vmem:[#allocation3] sm:$0x3]  ;;  %v207_v44 = vld [vmem:[#allocation2] sm:$0x3]  ;;  %p490_p2 = por %p489_p1, %p488_p0 }
  0x36   : > { %v199_v32 = vadd.f32 %v198_v28, %v197_v22  ;;  %v205_v33 = vrot.slane %v204_v29, 1  ;;  %v185_v34 = vmax.f32 %v183_v24, %v184_v30  ;;  %v191_v35 = vrot.slane %v190_v31, 1  ;;  %p491_p3 = pnand %p490_p2, %p484_p12 }
  0x38   : > { %v206_v37 = vadd.f32 %v205_v33, %v204_v29  ;;  %v192_v38 = vmax.f32 %v190_v31, %v191_v35 }
  0x3a   : > { %v235_v39 = vcombine.low %v199_v32, %v206_v37  ;;  %v210_v40 = vcombine.low %v185_v34, %v192_v38 }
  0x3c   : > { %v242_v41 = vrot.slane %v235_v39, %v216_v36  ;;  %v217_v42 = vrot.slane %v210_v40, %v216_v36 }
  0x3e   : > { %v249_v45 = vrot.slane %v242_v41, %v216_v36  ;;  %v224_v46 = vrot.slane %v217_v42, %v216_v36 }
  0x40   : > { %v251_v47 = vadd.f32 %v249_v45, %v232_v43  ;;  %v226_v48 = vmax.f32 %v207_v44, %v224_v46 }
  0x42   : > { %252 = vst.msk [vmem:[#allocation3] sm:$0x3] %vm672_vm0, %v251_v47  ;;  %231 = vst.msk [vmem:[#allocation2] sm:$0x3] %vm672_vm0, %v226_v48 }
  0x49   : > { %v256_v49 = vld [vmem:[#allocation2] sm:$0x3]  ;;  %v258_v50 = vld [vmem:[#allocation3] sm:$0x3] }
  0x4a   : > { %257 = vst.msk [vmem:[%s161_s22] ss:$2 sm:$0x3] %vm672_vm0, %v256_v49  ;;  %v260_v51 = vmul.f32 0.25, %v258_v50 }
  0x4c   : > { %379 = vst.msk [vmem:[%s161_s22 + $0x1] ss:$2 sm:$0x3] %vm672_vm0, %v260_v51 }
  0x4d   : > { %494 = shalt.err (!%p491_p3)
}
  0x4e   : > { %s495_s3 = scalar_lea.hbm %s278_s27, 64  ;;  %s499_s12 = scalar_lea.hbm %s736_s1, 128 }
  0x4f   : > { %p496_p5 = scmp.ne.s32.totalorder %s278_s27, %s495_s3  ;;  %p500_p10 = scmp.lt.s32.totalorder %s278_s27, %s736_s1 }
  0x50   : > { %p501_p4 = scmp.lt.s32.totalorder %s499_s12, %s495_s3 }
  0x51   : > { %p497_p6 = pnand %p496_p5, %p629_p9 }
  0x52   : > { %p502_p13 = por %p501_p4, %p500_p10 }
  0x53   : > { %p498_p7 = pneg %p497_p6 }
  0x55   : > { %p503_p8 = pnand %p502_p13, %p498_p7 }
  0x57   : > { %506 = shalt.err (!%p503_p8)
}
  0x58   : > { %389 = dma.vmem_to_hbm [thread:$0]  (%p629_p9), %s688_s23, 64, %s278_s27, %s264_s28  }
  0x59 PF: > { %s292_s16 = sand.u32 1, %s541_s6   ;;  %p744_p11 = scmp.ne.s32.totalorder %s740_s21, 0 }
  0x5a   : > { %p745_p12 = scmp.ge.s32.totalorder %s561_s11, 2  ;;  %s293_s17 = scalar_lea.sflag [#allocation6], %s292_s16 }
  0x5c   : > { %p396_p0 = pnand %p745_p12, %p744_p11 }
  0x5e   : > { %p397_p1 = pneg %p396_p0 }
  0x60   : > { %536 = dma.done.wait (%p397_p1), %s293_s17, 64  }
  0x61   : > { %538 = vsyncadd (%p397_p1), %s293_s17, 4294967232  ;;  %s17_s11 = sadd.s32 1, %s561_s11   ;;  %s746_s6 = smov %s545_s7 }
  0x62   : > { %p14_p2 = scmp.ge.s32.totalorder %s17_s11, 4   ;;  %s747_s7 = smov %s549_s8 }
  0x63   : > { %s748_s8 = smov %s634_s20  ;;  %s749_s9 = smov %s557_s10 }
  0x64   : > { %s750_s10 = smov %s752_s14  ;;  %16 = sbr.rel (!%p14_p2) target bundleno = 6 (0x6), region = 78 }
  0x69   :  { %298 = vsyncpa [#allocation5], 1 }
  0x6a   :  { %300 = vsyncpa [#allocation5 + $0x1], 1 }
  0x6b   :  { %301 = vsyncpa [#allocation6], 1 }
  0x6c   :  { %303 = vsyncpa [#allocation6 + $0x1], 1 }

</bundles_post_ra>
